<compile_context>
chip_gen: v7x
topology: tpu7x:2x2x1
jax: 0.10.0
libtpu: 0.0.40
codegen_flags: <defaults>
</compile_context>

<pallas_src>
import functools

import jax
import jax.numpy as jnp
from jax import lax
from jax.experimental import pallas as pl
from jax.experimental.pallas import tpu as pltpu

EPS = 1e-5  # PyTorch InstanceNorm2d default (affine=False, biased variance)


def _instance_norm_rows(h):
    # h: (C, HW); normalize each row over the lane axis (biased variance).
    mean = jnp.mean(h, axis=-1, keepdims=True)
    centered = h - mean                       # reused for var and normalize
    var = jnp.mean(centered * centered, axis=-1, keepdims=True)
    return centered * lax.rsqrt(var + EPS)


def _residual_block_kernel(H, W, x_ref, w1_ref, w2_ref, rc_ref, o_ref,
                           stack_ref):
    # x_ref    : (C, HW)    one batch element, HW lanes (row-major H x W)
    # w*_ref   : (C, 9*C)   tap-major conv weights, K = (kh, kw, c_in)
    # rc_ref   : (2, HW)    int32 row / col index per flat spatial position
    # o_ref    : (C, HW)
    # stack_ref: (9*C, HW)  VMEM scratch holding the 9 shifted activations
    C, HW = x_ref.shape

    x = x_ref[...]

    # Border masks from exact integer indices (two sublane broadcasts + four
    # compares per grid step; negligible).
    row = jnp.broadcast_to(rc_ref[0:1, :], (C, HW))
    col = jnp.broadcast_to(rc_ref[1:2, :], (C, HW))
    first_row = row == 0
    last_row = row == H - 1
    first_col = col == 0
    last_col = col == W - 1

    def conv3x3(a, w_ref):
        # Vertical taps: lane roll by +-W (XLU), reflect at rows 0 / H-1.
        up_raw = pltpu.roll(a, W, axis=1)        # value at row i-1 (wraps at i=0)
        dn_raw = pltpu.roll(a, HW - W, axis=1)   # value at row i+1 (wraps at i=H-1)
        vtaps = (
            jnp.where(first_row, dn_raw, up_raw),    # kh=0 -> reflect(i-1)
            a,                                       # kh=1 -> i
            jnp.where(last_row, up_raw, dn_raw),     # kh=2 -> reflect(i+1)
        )
        for kh in range(3):
            v = vtaps[kh]
            # Horizontal taps: lane roll by +-1, reflect at cols 0 / W-1.
            l_raw = pltpu.roll(v, 1, axis=1)         # value at col j-1
            r_raw = pltpu.roll(v, HW - 1, axis=1)    # value at col j+1
            htaps = (
                jnp.where(first_col, r_raw, l_raw),  # kw=0 -> reflect(j-1)
                v,                                   # kw=1 -> j
                jnp.where(last_col, l_raw, r_raw),   # kw=2 -> reflect(j+1)
            )
            for kw in range(3):
                t = kh * 3 + kw
                stack_ref[t * C:(t + 1) * C, :] = htaps[kw]
        # One K-concatenated MXU matmul per conv stage (f32 accumulation).
        return jnp.dot(w_ref[...], stack_ref[...],
                       preferred_element_type=jnp.float32)

    # stage 1: conv -> instance norm -> relu   (stays in vregs/VMEM)
    h = conv3x3(x, w1_ref)
    h = jnp.maximum(_instance_norm_rows(h), 0.0)

    # stage 2: conv -> instance norm -> residual add
    h = conv3x3(h, w2_ref)
    o_ref[...] = x + _instance_norm_rows(h)


@jax.jit
def residual_block(x, w1, b1, w2, b2):
    """x: (B, C, H, W) f32; w*: (C, C, 3, 3); b*: (C,) (cancel, unused)."""
    B, C, H, W = x.shape
    assert H >= 2 and W >= 2, "ReflectionPad2d(1) needs H >= 2 and W >= 2"
    HW = H * W

    x3d = x.reshape(B, C, HW)

    # (C_out, C_in, 3, 3) -> (C_out, 9*C_in), K ordered (kh, kw, c_in) to match
    # the stacking order of the shifted activations in the kernel.
    def tap_major(w):
        return w.transpose(0, 2, 3, 1).reshape(C, 9 * C)

    w1m = tap_major(w1)
    w2m = tap_major(w2)

    # Conv bias is immediately followed by InstanceNorm2d(affine=False), which
    # subtracts the per-channel spatial mean -> b1/b2 cancel exactly.
    del b1, b2

    # Exact integer row/col index per flat spatial position (border masks).
    rowc = jnp.repeat(jnp.arange(H, dtype=jnp.int32), W)
    colc = jnp.tile(jnp.arange(W, dtype=jnp.int32), H)
    rc = jnp.stack([rowc, colc])                  # (2, HW) int32

    kernel = functools.partial(_residual_block_kernel, H, W)

    flops = 2 * 2 * 9 * B * C * C * HW            # true MACs, two conv stages
    bytes_accessed = 4 * (2 * B * C * HW + 2 * 9 * C * C + 2 * HW)

    y3d = pl.pallas_call(
        kernel,
        out_shape=jax.ShapeDtypeStruct((B, C, HW), jnp.float32),
        grid=(B,),
        in_specs=[
            pl.BlockSpec((None, C, HW), lambda b: (b, 0, 0)),   # x, per batch
            pl.BlockSpec((C, 9 * C), lambda b: (0, 0)),         # w1, resident
            pl.BlockSpec((C, 9 * C), lambda b: (0, 0)),         # w2, resident
            pl.BlockSpec((2, HW), lambda b: (0, 0)),            # row/col table
        ],
        out_specs=pl.BlockSpec((None, C, HW), lambda b: (b, 0, 0)),
        scratch_shapes=[pltpu.VMEM((9 * C, HW), jnp.float32)],
        compiler_params=pltpu.CompilerParams(
            dimension_semantics=("parallel",)),
        cost_estimate=pl.CostEstimate(
            flops=flops, transcendentals=2 * B * C,
            bytes_accessed=bytes_accessed),
    )(x3d, w1m, w2m, rc)

    return y3d.reshape(B, C, H, W)


# ------------------------- pure-JAX reference -------------------------
def _reflect_pad(x):
    return jnp.pad(x, ((0, 0), (0, 0), (1, 1), (1, 1)), mode="reflect")


def _ref_conv(x, w, b):
    y = lax.conv_general_dilated(
        _reflect_pad(x), w, window_strides=(1, 1), padding="VALID",
        dimension_numbers=("NCHW", "OIHW", "NCHW"))
    return y + b[None, :, None, None]


def _ref_instance_norm(x):
    mean = jnp.mean(x, axis=(2, 3), keepdims=True)
    var = jnp.mean((x - mean) ** 2, axis=(2, 3), keepdims=True)
    return (x - mean) * lax.rsqrt(var + EPS)


def residual_block_ref(x, w1, b1, w2, b2):
    h = jnp.maximum(_ref_instance_norm(_ref_conv(x, w1, b1)), 0.0)
    h = _ref_instance_norm(_ref_conv(h, w2, b2))
    return x + h


if __name__ == "__main__":
    B, C, H, W = 2, 4, 16, 16
    key = jax.random.PRNGKey(0)
    kx, kw1, kb1, kw2, kb2 = jax.random.split(key, 5)

    x = jax.random.normal(kx, (B, C, H, W), dtype=jnp.float32)
    # deterministic synthetic parameters (Conv2d(C, C, 3) x 2, with bias)
    w1 = 0.1 * jax.random.normal(kw1, (C, C, 3, 3), dtype=jnp.float32)
    b1 = 0.1 * jax.random.normal(kb1, (C,), dtype=jnp.float32)
    w2 = 0.1 * jax.random.normal(kw2, (C, C, 3, 3), dtype=jnp.float32)
    b2 = 0.1 * jax.random.normal(kb2, (C,), dtype=jnp.float32)

    y = jax.block_until_ready(residual_block(x, w1, b1, w2, b2))

    y_ref = residual_block_ref(x, w1, b1, w2, b2)
    assert y.shape == (B, C, H, W)
    assert jnp.allclose(y, y_ref, atol=5e-4, rtol=5e-4), "mismatch vs reference"

    print("KERNEL_OK")
</pallas_src>

<mosaic_0001>
module attributes {stable_mosaic.version = 11 : i64} {
  func.func @_residual_block_kernel(%arg0: i32, %arg1: memref<1x4x256xf32, #tpu.memory_space<vmem>>, %arg2: memref<4x36xf32, #tpu.memory_space<vmem>>, %arg3: memref<4x36xf32, #tpu.memory_space<vmem>>, %arg4: memref<2x256xi32, #tpu.memory_space<vmem>>, %arg5: memref<1x4x256xf32, #tpu.memory_space<vmem>>, %arg6: memref<36x256xf32, #tpu.memory_space<vmem>>) attributes {dimension_semantics = [#tpu.dimension_semantics<parallel>], iteration_bounds = array<i64: 2>, scalar_prefetch = 0 : i64, scratch_operands = 1 : i64, tpu.core_type = #tpu.core_type<tc>, window_params = [{transform_indices = @transform_0, window_bounds = array<i64: 1, 4, 256>}, {pipeline_mode = #tpu.pipeline_mode<synchronous>, transform_indices = @transform_1, window_bounds = array<i64: 4, 36>}, {pipeline_mode = #tpu.pipeline_mode<synchronous>, transform_indices = @transform_2, window_bounds = array<i64: 4, 36>}, {pipeline_mode = #tpu.pipeline_mode<synchronous>, transform_indices = @transform_3, window_bounds = array<i64: 2, 256>}, {transform_indices = @transform_4, window_bounds = array<i64: 1, 4, 256>}]} {
    %c0 = arith.constant 0 : index
    %c0_0 = arith.constant 0 : index
    %c0_1 = arith.constant 0 : index
    %0 = vector.load %arg1[%c0, %c0_0, %c0_1] : memref<1x4x256xf32, #tpu.memory_space<vmem>>, vector<1x4x256xf32>
    %1 = vector.shape_cast %0 : vector<1x4x256xf32> to vector<4x256xf32>
    %c0_2 = arith.constant 0 : index
    %c0_3 = arith.constant 0 : index
    %2 = vector.load %arg4[%c0_2, %c0_3] : memref<2x256xi32, #tpu.memory_space<vmem>>, vector<1x256xi32>
    %3 = vector.shape_cast %2 : vector<1x256xi32> to vector<1x256xi32>
    %4 = vector.broadcast %3 : vector<1x256xi32> to vector<4x256xi32>
    %c1 = arith.constant 1 : index
    %c0_4 = arith.constant 0 : index
    %5 = vector.load %arg4[%c1, %c0_4] : memref<2x256xi32, #tpu.memory_space<vmem>>, vector<1x256xi32>
    %6 = vector.shape_cast %5 : vector<1x256xi32> to vector<1x256xi32>
    %7 = vector.broadcast %6 : vector<1x256xi32> to vector<4x256xi32>
    %c0_i32 = arith.constant 0 : i32
    %8 = vector.broadcast %c0_i32 : i32 to vector<4x256xi32>
    %9 = arith.cmpi eq, %4, %8 : vector<4x256xi32>
    %c15_i32 = arith.constant 15 : i32
    %10 = vector.broadcast %c15_i32 : i32 to vector<4x256xi32>
    %11 = arith.cmpi eq, %4, %10 : vector<4x256xi32>
    %c0_i32_5 = arith.constant 0 : i32
    %12 = vector.broadcast %c0_i32_5 : i32 to vector<4x256xi32>
    %13 = arith.cmpi eq, %7, %12 : vector<4x256xi32>
    %c15_i32_6 = arith.constant 15 : i32
    %14 = vector.broadcast %c15_i32_6 : i32 to vector<4x256xi32>
    %15 = arith.cmpi eq, %7, %14 : vector<4x256xi32>
    %c16_i32 = arith.constant 16 : i32
    %16 = tpu.dynamic_rotate %1 by %c16_i32 dim 1 : vector<4x256xf32>, i32 -> vector<4x256xf32>
    %c240_i32 = arith.constant 240 : i32
    %17 = tpu.dynamic_rotate %1 by %c240_i32 dim 1 : vector<4x256xf32>, i32 -> vector<4x256xf32>
    %18 = arith.select %9, %17, %16 : vector<4x256xi1>, vector<4x256xf32>
    %19 = arith.select %11, %16, %17 : vector<4x256xi1>, vector<4x256xf32>
    %c1_i32 = arith.constant 1 : i32
    %20 = tpu.dynamic_rotate %18 by %c1_i32 dim 1 : vector<4x256xf32>, i32 -> vector<4x256xf32>
    %c255_i32 = arith.constant 255 : i32
    %21 = tpu.dynamic_rotate %18 by %c255_i32 dim 1 : vector<4x256xf32>, i32 -> vector<4x256xf32>
    %22 = arith.select %13, %21, %20 : vector<4x256xi1>, vector<4x256xf32>
    %23 = arith.select %15, %20, %21 : vector<4x256xi1>, vector<4x256xf32>
    %c0_7 = arith.constant 0 : index
    %c0_8 = arith.constant 0 : index
    %24 = vector.load %arg6[%c0_7, %c0_8] : memref<36x256xf32, #tpu.memory_space<vmem>>, vector<4x256xf32>
    tpu.vector_store %arg6[%c0_7, %c0_8], %22 {strides = array<i32>} : memref<36x256xf32, #tpu.memory_space<vmem>>, vector<4x256xf32>,
    %c4 = arith.constant 4 : index
    %c0_9 = arith.constant 0 : index
    %25 = vector.load %arg6[%c4, %c0_9] : memref<36x256xf32, #tpu.memory_space<vmem>>, vector<4x256xf32>
    tpu.vector_store %arg6[%c4, %c0_9], %18 {strides = array<i32>} : memref<36x256xf32, #tpu.memory_space<vmem>>, vector<4x256xf32>,
    %c8 = arith.constant 8 : index
    %c0_10 = arith.constant 0 : index
    %26 = vector.load %arg6[%c8, %c0_10] : memref<36x256xf32, #tpu.memory_space<vmem>>, vector<4x256xf32>
    tpu.vector_store %arg6[%c8, %c0_10], %23 {strides = array<i32>} : memref<36x256xf32, #tpu.memory_space<vmem>>, vector<4x256xf32>,
    %c1_i32_11 = arith.constant 1 : i32
    %27 = tpu.dynamic_rotate %1 by %c1_i32_11 dim 1 : vector<4x256xf32>, i32 -> vector<4x256xf32>
    %c255_i32_12 = arith.constant 255 : i32
    %28 = tpu.dynamic_rotate %1 by %c255_i32_12 dim 1 : vector<4x256xf32>, i32 -> vector<4x256xf32>
    %29 = arith.select %13, %28, %27 : vector<4x256xi1>, vector<4x256xf32>
    %30 = arith.select %15, %27, %28 : vector<4x256xi1>, vector<4x256xf32>
    %c12 = arith.constant 12 : index
    %c0_13 = arith.constant 0 : index
    %31 = vector.load %arg6[%c12, %c0_13] : memref<36x256xf32, #tpu.memory_space<vmem>>, vector<4x256xf32>
    tpu.vector_store %arg6[%c12, %c0_13], %29 {strides = array<i32>} : memref<36x256xf32, #tpu.memory_space<vmem>>, vector<4x256xf32>,
    %c16 = arith.constant 16 : index
    %c0_14 = arith.constant 0 : index
    %32 = vector.load %arg6[%c16, %c0_14] : memref<36x256xf32, #tpu.memory_space<vmem>>, vector<4x256xf32>
    tpu.vector_store %arg6[%c16, %c0_14], %1 {strides = array<i32>} : memref<36x256xf32, #tpu.memory_space<vmem>>, vector<4x256xf32>,
    %c20 = arith.constant 20 : index
    %c0_15 = arith.constant 0 : index
    %33 = vector.load %arg6[%c20, %c0_15] : memref<36x256xf32, #tpu.memory_space<vmem>>, vector<4x256xf32>
    tpu.vector_store %arg6[%c20, %c0_15], %30 {strides = array<i32>} : memref<36x256xf32, #tpu.memory_space<vmem>>, vector<4x256xf32>,
    %c1_i32_16 = arith.constant 1 : i32
    %34 = tpu.dynamic_rotate %19 by %c1_i32_16 dim 1 : vector<4x256xf32>, i32 -> vector<4x256xf32>
    %c255_i32_17 = arith.constant 255 : i32
    %35 = tpu.dynamic_rotate %19 by %c255_i32_17 dim 1 : vector<4x256xf32>, i32 -> vector<4x256xf32>
    %36 = arith.select %13, %35, %34 : vector<4x256xi1>, vector<4x256xf32>
    %37 = arith.select %15, %34, %35 : vector<4x256xi1>, vector<4x256xf32>
    %c24 = arith.constant 24 : index
    %c0_18 = arith.constant 0 : index
    %38 = vector.load %arg6[%c24, %c0_18] : memref<36x256xf32, #tpu.memory_space<vmem>>, vector<4x256xf32>
    tpu.vector_store %arg6[%c24, %c0_18], %36 {strides = array<i32>} : memref<36x256xf32, #tpu.memory_space<vmem>>, vector<4x256xf32>,
    %c28 = arith.constant 28 : index
    %c0_19 = arith.constant 0 : index
    %39 = vector.load %arg6[%c28, %c0_19] : memref<36x256xf32, #tpu.memory_space<vmem>>, vector<4x256xf32>
    tpu.vector_store %arg6[%c28, %c0_19], %19 {strides = array<i32>} : memref<36x256xf32, #tpu.memory_space<vmem>>, vector<4x256xf32>,
    %c32 = arith.constant 32 : index
    %c0_20 = arith.constant 0 : index
    %40 = vector.load %arg6[%c32, %c0_20] : memref<36x256xf32, #tpu.memory_space<vmem>>, vector<4x256xf32>
    tpu.vector_store %arg6[%c32, %c0_20], %37 {strides = array<i32>} : memref<36x256xf32, #tpu.memory_space<vmem>>, vector<4x256xf32>,
    %c0_21 = arith.constant 0 : index
    %c0_22 = arith.constant 0 : index
    %41 = vector.load %arg2[%c0_21, %c0_22] : memref<4x36xf32, #tpu.memory_space<vmem>>, vector<4x36xf32>
    %c0_23 = arith.constant 0 : index
    %c0_24 = arith.constant 0 : index
    %42 = vector.load %arg6[%c0_23, %c0_24] : memref<36x256xf32, #tpu.memory_space<vmem>>, vector<36x256xf32>
    %cst = arith.constant dense<0.000000e+00> : vector<4x256xf32>
    %43 = tpu.matmul %41, %42, %cst {dimension_numbers = #tpu.dot_dimension_numbers<[1], [0], [0], [1], [0, 0, 1, 1], [], []>} : vector<4x36xf32>, vector<36x256xf32>, vector<4x256xf32> -> vector<4x256xf32>
    %cst_25 = arith.constant dense<0.000000e+00> : vector<4xf32>
    %44 = vector.multi_reduction <add>, %43, %cst_25 [1] : vector<4x256xf32> to vector<4xf32>
    %45 = vector.shape_cast %44 : vector<4xf32> to vector<4x1xf32>
    %cst_26 = arith.constant 2.560000e+02 : f32
    %46 = vector.broadcast %cst_26 : f32 to vector<4x1xf32>
    %47 = arith.divf %45, %46 : vector<4x1xf32>
    %48 = vector.broadcast %47 : vector<4x1xf32> to vector<4x256xf32>
    %49 = arith.subf %43, %48 : vector<4x256xf32>
    %50 = arith.mulf %49, %49 : vector<4x256xf32>
    %cst_27 = arith.constant dense<0.000000e+00> : vector<4xf32>
    %51 = vector.multi_reduction <add>, %50, %cst_27 [1] : vector<4x256xf32> to vector<4xf32>
    %52 = vector.shape_cast %51 : vector<4xf32> to vector<4x1xf32>
    %cst_28 = arith.constant 2.560000e+02 : f32
    %53 = vector.broadcast %cst_28 : f32 to vector<4x1xf32>
    %54 = arith.divf %52, %53 : vector<4x1xf32>
    %cst_29 = arith.constant 9.99999974E-6 : f32
    %55 = vector.broadcast %cst_29 : f32 to vector<4x1xf32>
    %56 = arith.addf %54, %55 : vector<4x1xf32>
    %57 = math.rsqrt %56 : vector<4x1xf32>
    %58 = vector.broadcast %57 : vector<4x1xf32> to vector<4x256xf32>
    %59 = arith.mulf %49, %58 : vector<4x256xf32>
    %cst_30 = arith.constant 0.000000e+00 : f32
    %60 = vector.broadcast %cst_30 : f32 to vector<4x256xf32>
    %61 = arith.maximumf %59, %60 : vector<4x256xf32>
    %c16_i32_31 = arith.constant 16 : i32
    %62 = tpu.dynamic_rotate %61 by %c16_i32_31 dim 1 : vector<4x256xf32>, i32 -> vector<4x256xf32>
    %c240_i32_32 = arith.constant 240 : i32
    %63 = tpu.dynamic_rotate %61 by %c240_i32_32 dim 1 : vector<4x256xf32>, i32 -> vector<4x256xf32>
    %64 = arith.select %9, %63, %62 : vector<4x256xi1>, vector<4x256xf32>
    %65 = arith.select %11, %62, %63 : vector<4x256xi1>, vector<4x256xf32>
    %c1_i32_33 = arith.constant 1 : i32
    %66 = tpu.dynamic_rotate %64 by %c1_i32_33 dim 1 : vector<4x256xf32>, i32 -> vector<4x256xf32>
    %c255_i32_34 = arith.constant 255 : i32
    %67 = tpu.dynamic_rotate %64 by %c255_i32_34 dim 1 : vector<4x256xf32>, i32 -> vector<4x256xf32>
    %68 = arith.select %13, %67, %66 : vector<4x256xi1>, vector<4x256xf32>
    %69 = arith.select %15, %66, %67 : vector<4x256xi1>, vector<4x256xf32>
    %c0_35 = arith.constant 0 : index
    %c0_36 = arith.constant 0 : index
    %70 = vector.load %arg6[%c0_35, %c0_36] : memref<36x256xf32, #tpu.memory_space<vmem>>, vector<4x256xf32>
    tpu.vector_store %arg6[%c0_35, %c0_36], %68 {strides = array<i32>} : memref<36x256xf32, #tpu.memory_space<vmem>>, vector<4x256xf32>,
    %c4_37 = arith.constant 4 : index
    %c0_38 = arith.constant 0 : index
    %71 = vector.load %arg6[%c4_37, %c0_38] : memref<36x256xf32, #tpu.memory_space<vmem>>, vector<4x256xf32>
    tpu.vector_store %arg6[%c4_37, %c0_38], %64 {strides = array<i32>} : memref<36x256xf32, #tpu.memory_space<vmem>>, vector<4x256xf32>,
    %c8_39 = arith.constant 8 : index
    %c0_40 = arith.constant 0 : index
    %72 = vector.load %arg6[%c8_39, %c0_40] : memref<36x256xf32, #tpu.memory_space<vmem>>, vector<4x256xf32>
    tpu.vector_store %arg6[%c8_39, %c0_40], %69 {strides = array<i32>} : memref<36x256xf32, #tpu.memory_space<vmem>>, vector<4x256xf32>,
    %c1_i32_41 = arith.constant 1 : i32
    %73 = tpu.dynamic_rotate %61 by %c1_i32_41 dim 1 : vector<4x256xf32>, i32 -> vector<4x256xf32>
    %c255_i32_42 = arith.constant 255 : i32
    %74 = tpu.dynamic_rotate %61 by %c255_i32_42 dim 1 : vector<4x256xf32>, i32 -> vector<4x256xf32>
    %75 = arith.select %13, %74, %73 : vector<4x256xi1>, vector<4x256xf32>
    %76 = arith.select %15, %73, %74 : vector<4x256xi1>, vector<4x256xf32>
    %c12_43 = arith.constant 12 : index
    %c0_44 = arith.constant 0 : index
    %77 = vector.load %arg6[%c12_43, %c0_44] : memref<36x256xf32, #tpu.memory_space<vmem>>, vector<4x256xf32>
    tpu.vector_store %arg6[%c12_43, %c0_44], %75 {strides = array<i32>} : memref<36x256xf32, #tpu.memory_space<vmem>>, vector<4x256xf32>,
    %c16_45 = arith.constant 16 : index
    %c0_46 = arith.constant 0 : index
    %78 = vector.load %arg6[%c16_45, %c0_46] : memref<36x256xf32, #tpu.memory_space<vmem>>, vector<4x256xf32>
    tpu.vector_store %arg6[%c16_45, %c0_46], %61 {strides = array<i32>} : memref<36x256xf32, #tpu.memory_space<vmem>>, vector<4x256xf32>,
    %c20_47 = arith.constant 20 : index
    %c0_48 = arith.constant 0 : index
    %79 = vector.load %arg6[%c20_47, %c0_48] : memref<36x256xf32, #tpu.memory_space<vmem>>, vector<4x256xf32>
    tpu.vector_store %arg6[%c20_47, %c0_48], %76 {strides = array<i32>} : memref<36x256xf32, #tpu.memory_space<vmem>>, vector<4x256xf32>,
    %c1_i32_49 = arith.constant 1 : i32
    %80 = tpu.dynamic_rotate %65 by %c1_i32_49 dim 1 : vector<4x256xf32>, i32 -> vector<4x256xf32>
    %c255_i32_50 = arith.constant 255 : i32
    %81 = tpu.dynamic_rotate %65 by %c255_i32_50 dim 1 : vector<4x256xf32>, i32 -> vector<4x256xf32>
    %82 = arith.select %13, %81, %80 : vector<4x256xi1>, vector<4x256xf32>
    %83 = arith.select %15, %80, %81 : vector<4x256xi1>, vector<4x256xf32>
    %c24_51 = arith.constant 24 : index
    %c0_52 = arith.constant 0 : index
    %84 = vector.load %arg6[%c24_51, %c0_52] : memref<36x256xf32, #tpu.memory_space<vmem>>, vector<4x256xf32>
    tpu.vector_store %arg6[%c24_51, %c0_52], %82 {strides = array<i32>} : memref<36x256xf32, #tpu.memory_space<vmem>>, vector<4x256xf32>,
    %c28_53 = arith.constant 28 : index
    %c0_54 = arith.constant 0 : index
    %85 = vector.load %arg6[%c28_53, %c0_54] : memref<36x256xf32, #tpu.memory_space<vmem>>, vector<4x256xf32>
    tpu.vector_store %arg6[%c28_53, %c0_54], %65 {strides = array<i32>} : memref<36x256xf32, #tpu.memory_space<vmem>>, vector<4x256xf32>,
    %c32_55 = arith.constant 32 : index
    %c0_56 = arith.constant 0 : index
    %86 = vector.load %arg6[%c32_55, %c0_56] : memref<36x256xf32, #tpu.memory_space<vmem>>, vector<4x256xf32>
    tpu.vector_store %arg6[%c32_55, %c0_56], %83 {strides = array<i32>} : memref<36x256xf32, #tpu.memory_space<vmem>>, vector<4x256xf32>,
    %c0_57 = arith.constant 0 : index
    %c0_58 = arith.constant 0 : index
    %87 = vector.load %arg3[%c0_57, %c0_58] : memref<4x36xf32, #tpu.memory_space<vmem>>, vector<4x36xf32>
    %c0_59 = arith.constant 0 : index
    %c0_60 = arith.constant 0 : index
    %88 = vector.load %arg6[%c0_59, %c0_60] : memref<36x256xf32, #tpu.memory_space<vmem>>, vector<36x256xf32>
    %cst_61 = arith.constant dense<0.000000e+00> : vector<4x256xf32>
    %89 = tpu.matmul %87, %88, %cst_61 {dimension_numbers = #tpu.dot_dimension_numbers<[1], [0], [0], [1], [0, 0, 1, 1], [], []>} : vector<4x36xf32>, vector<36x256xf32>, vector<4x256xf32> -> vector<4x256xf32>
    %cst_62 = arith.constant dense<0.000000e+00> : vector<4xf32>
    %90 = vector.multi_reduction <add>, %89, %cst_62 [1] : vector<4x256xf32> to vector<4xf32>
    %91 = vector.shape_cast %90 : vector<4xf32> to vector<4x1xf32>
    %cst_63 = arith.constant 2.560000e+02 : f32
    %92 = vector.broadcast %cst_63 : f32 to vector<4x1xf32>
    %93 = arith.divf %91, %92 : vector<4x1xf32>
    %94 = vector.broadcast %93 : vector<4x1xf32> to vector<4x256xf32>
    %95 = arith.subf %89, %94 : vector<4x256xf32>
    %96 = arith.mulf %95, %95 : vector<4x256xf32>
    %cst_64 = arith.constant dense<0.000000e+00> : vector<4xf32>
    %97 = vector.multi_reduction <add>, %96, %cst_64 [1] : vector<4x256xf32> to vector<4xf32>
    %98 = vector.shape_cast %97 : vector<4xf32> to vector<4x1xf32>
    %cst_65 = arith.constant 2.560000e+02 : f32
    %99 = vector.broadcast %cst_65 : f32 to vector<4x1xf32>
    %100 = arith.divf %98, %99 : vector<4x1xf32>
    %cst_66 = arith.constant 9.99999974E-6 : f32
    %101 = vector.broadcast %cst_66 : f32 to vector<4x1xf32>
    %102 = arith.addf %100, %101 : vector<4x1xf32>
    %103 = math.rsqrt %102 : vector<4x1xf32>
    %104 = vector.broadcast %103 : vector<4x1xf32> to vector<4x256xf32>
    %105 = arith.mulf %95, %104 : vector<4x256xf32>
    %106 = arith.addf %1, %105 : vector<4x256xf32>
    %c0_67 = arith.constant 0 : index
    %c0_68 = arith.constant 0 : index
    %c0_69 = arith.constant 0 : index
    %107 = vector.load %arg5[%c0_67, %c0_68, %c0_69] : memref<1x4x256xf32, #tpu.memory_space<vmem>>, vector<1x4x256xf32>
    %108 = vector.shape_cast %107 : vector<1x4x256xf32> to vector<4x256xf32>
    %109 = vector.shape_cast %106 : vector<4x256xf32> to vector<1x4x256xf32>
    tpu.vector_store %arg5[%c0_67, %c0_68, %c0_69], %109 {strides = array<i32>} : memref<1x4x256xf32, #tpu.memory_space<vmem>>, vector<1x4x256xf32>,
    return
  }
  func.func @transform_0(%arg0: i32) -> (i32, i32, i32) {
    %c0_i32 = arith.constant 0 : i32
    %c0_i32_0 = arith.constant 0 : i32
    %c0_i32_1 = arith.constant 0 : i32
    return %arg0, %c0_i32, %c0_i32_0 : i32, i32, i32
  }
  func.func @transform_1(%arg0: i32) -> (i32, i32) {
    %c0_i32 = arith.constant 0 : i32
    %c0_i32_0 = arith.constant 0 : i32
    %c0_i32_1 = arith.constant 0 : i32
    return %c0_i32, %c0_i32_0 : i32, i32
  }
  func.func @transform_2(%arg0: i32) -> (i32, i32) {
    %c0_i32 = arith.constant 0 : i32
    %c0_i32_0 = arith.constant 0 : i32
    %c0_i32_1 = arith.constant 0 : i32
    return %c0_i32, %c0_i32_0 : i32, i32
  }
  func.func @transform_3(%arg0: i32) -> (i32, i32) {
    %c0_i32 = arith.constant 0 : i32
    %c0_i32_0 = arith.constant 0 : i32
    %c0_i32_1 = arith.constant 0 : i32
    return %c0_i32, %c0_i32_0 : i32, i32
  }
  func.func @transform_4(%arg0: i32) -> (i32, i32, i32) {
    %c0_i32 = arith.constant 0 : i32
    %c0_i32_0 = arith.constant 0 : i32
    %c0_i32_1 = arith.constant 0 : i32
    return %arg0, %c0_i32, %c0_i32_0 : i32, i32, i32
  }
}

</mosaic_0001>

<bundles_post_ra>
// kernel: tile.9
= control target key start
LH: loop header
LB: loop body
LE: loop exit
PB: predicated region body
PF: predicated region fallthrough
CT: control target
= control target key end

     0   :  { %s7_s6 = smov 3  ;;  %s21_s9 = smov 3  ;;  %vm4_vm0 = vcmask 130048   ;;  %vm11_vm1 = vcmask 1048448   ;;  %vm18_vm2 = vcmask 917248   ;;  %vm25_vm3 = vcmask 786048   ;;  %s128_s0 = inlined_call_operand.vmem [shape: s32[16,16], index: 0, kind: input, shape index: {}]   ;;  %s129_s1 = inlined_call_operand.vmem [shape: s32[1,256], index: 1, kind: output, shape index: {}]  }
   0x1   :  { %v66_v0 = vld [vmem:[%s128_s0 + $0x7] ss:$8 sm:%s7_s6]   ;;  %s81_s10 = smov 112   ;;  %v68_v1 = vld [vmem:[%s128_s0 + $0x5] ss:$8 sm:%s21_s9]   ;;  %s14_s13 = smov 3 }
   0x2   :  { %9 = vrot.lane.b32.xlu0 %v66_v0, %s81_s10  ;;  %s82_s14 = smov 80   ;;  %v67_v2 = vld [vmem:[%s128_s0 + $0x6] ss:$8 sm:%s14_s13]   ;;  %s28_s17 = smov 3  ;;  %vm32_vm4 = vcmask 654848   ;;  %vm39_vm5 = vcmask 523648  }
   0x3   :  { %23 = vrot.lane.b32.xlu1 %v68_v1, %s82_s14  ;;  %v69_v3 = vld [vmem:[%s128_s0 + $0x4] ss:$8 sm:%s28_s17]   ;;  %s35_s20 = smov 3  ;;  %s42_s21 = smov 3  ;;  %vm46_vm6 = vcmask 392448   ;;  %vm53_vm7 = vcmask 261248  }
   0x4   :  { %s83_s22 = smov 96   ;;  %s84_s23 = smov 64   ;;  %v70_v4 = vld [vmem:[%s128_s0 + $0x3] ss:$8 sm:%s35_s20]   ;;  %v71_v5 = vld [vmem:[%s128_s0 + $0x2] ss:$8 sm:%s42_s21]  }
   0x5   :  { %s2_s26 = smov 3  ;;  %s49_s29 = smov 3 }
   0x6   :  { %16 = vrot.lane.b32.xlu0 %v67_v2, %s83_s22  ;;  %v3_v6 = vld [vmem:[%s128_s0] ss:$8 sm:%s2_s26]   ;;  %s85_s3 = smov 48   ;;  %s86_s4 = smov 32  }
   0x7   :  { %30 = vrot.lane.b32.xlu1 %v69_v3, %s84_s23  ;;  %5 = vst.msk [vmem:[#allocation0] ss:$8 sm:$0x3] %vm4_vm0, %v3_v6   ;;  %v72_v7 = vld [vmem:[%s128_s0 + $0x1] ss:$8 sm:%s49_s29]   ;;  %s87_s0 = smov 16  }
   0xa   :  { %37 = vrot.lane.b32.xlu0 %v70_v4, %s85_s3 }
   0xb   :  { %44 = vrot.lane.b32.xlu1 %v71_v5, %s86_s4 }
   0xe   :  { %51 = vrot.lane.b32.xlu0 %v72_v7, %s87_s0 }
  0x74   :  { %v10_v8 = vpop.permute.xlu0 %9  }
  0x75   :  { %12 = vst.msk [vmem:[#allocation0] ss:$8 sm:$0x3] %vm11_vm1, %v10_v8   ;;  %v24_v9 = vpop.permute.xlu1 %23  }
  0x78   :  { %v17_v10 = vpop.permute.xlu0 %16  }
  0x79   :  { %19 = vst.msk [vmem:[#allocation0] ss:$8 sm:$0x3] %vm18_vm2, %v17_v10   ;;  %v31_v11 = vpop.permute.xlu1 %30  }
  0x7a   :  { %26 = vst.msk [vmem:[#allocation0] ss:$8 sm:$0x3] %vm25_vm3, %v24_v9  }
  0x7b   :  { %33 = vst.msk [vmem:[#allocation0] ss:$8 sm:$0x3] %vm32_vm4, %v31_v11  }
  0x7c   :  { %v38_v12 = vpop.permute.xlu0 %37  }
  0x7d   :  { %40 = vst.msk [vmem:[#allocation0] ss:$8 sm:$0x3] %vm39_vm5, %v38_v12   ;;  %v45_v13 = vpop.permute.xlu1 %44  }
  0x7e   :  { %47 = vst.msk [vmem:[#allocation0] ss:$8 sm:$0x3] %vm46_vm6, %v45_v13  }
  0x80   :  { %v52_v14 = vpop.permute.xlu0 %51  }
  0x81   :  { %54 = vst.msk [vmem:[#allocation0] ss:$8 sm:$0x3] %vm53_vm7, %v52_v14  }
  0x88   :  { %v58_v15 = vld [vmem:[#allocation0] sm:$0x1]  ;;  %v62_v16 = vld [vmem:[#allocation0 + $0x8] sm:$0x1] }
  0x89   :  { %60 = vst [vmem:[%s129_s1] sm:$0x1] %v58_v15  ;;  %73 = vst [vmem:[%s129_s1 + $0x1] sm:$0x1] %v62_v16 }

// kernel: residual_block.1
= control target key start
LH: loop header
LB: loop body
LE: loop exit
PB: predicated region body
PF: predicated region fallthrough
CT: control target
= control target key end

     0   :  { %s827_s15 = smov 0   ;;  %s1069_s0 = inlined_call_operand.vmem [shape: f32[2,4,256], index: 0, kind: input, shape index: {}]   ;;  %s1070_s1 = inlined_call_operand.vmem [shape: f32[4,36], index: 1, kind: input, shape index: {}]   ;;  %s1071_s2 = inlined_call_operand.vmem [shape: f32[4,36], index: 2, kind: input, shape index: {}]   ;;  %s1072_s3 = inlined_call_operand.vmem [shape: s32[2,256], index: 3, kind: input, shape index: {}]   ;;  %s1073_s4 = inlined_call_operand.vmem [shape: f32[2,4,256], index: 4, kind: output, shape index: {}]  }
   0x1 LB: > { %s735_s16 = sadd.s32 4294967295, %s795_s15   ;;  %p739_p0 = scmp.ge.s32.totalorder %s795_s15, 1  ;;  %s795_s15 = sphi %s827_s15, %s14_s15  }
   0x2   : > { %p162_p1 = scmp.lt.s32.totalorder %s795_s15, 3 }
   0x4   : > { %p163_p2 = pnand %p739_p0, %p162_p1 }
   0x5   : > { %p188_p3 = scmp.lt.s32.totalorder (!%p163_p2), %s735_s16, 1  ;;  %s797_s21 = smov (!%p163_p2), 112   ;;  %v200_v2 = vlaneseq (!%p163_p2)  ;;  %v199_v6 = vld [vmem:[%s1072_s3] ss:$2 sm:$0x3] (!%p163_p2)  ;;  %v801_v45 = vmov (!%p163_p2), 0.0  }
   0x6   : > { %166 = sbr.rel (%p163_p2) target bundleno = 1608 (0x648), region = 36  ;;  %s798_s22 = smov (!%p163_p2), 16   ;;  %v744_v12 = vld [vmem:[%s1072_s3 + $0x1] ss:$2 sm:$0x3] (!%p163_p2)  ;;  %427 = vmatprep.mubr.f32.mxu0 (!%p163_p2), %v801_v45  ;;  %647 = vmatprep.mubr.f32.mxu1 (!%p163_p2), %v801_v45  ;;  %vm356_vm12 = vcmask (!%p163_p2), 1043456  }
   0x7   : > { %s799_s23 = smov (!%p163_p2), 1   ;;  %s800_s24 = smov (!%p163_p2), 127   ;;  %v201_v3 = vshrl.u32 (!%p163_p2), %v200_v2, 7  ;;  %v863_v7 = vand.u32 (!%p163_p2), 127, %v200_v2  ;;  %vm352_vm13 = vcmask (!%p163_p2), 293888  }
   0x9   : > { %v202_v4 = vsub.s32 (!%p163_p2), 0, %v201_v3  ;;  %v206_v5 = vsub.s32 (!%p163_p2), 1, %v201_v3  ;;  %vm242_vm0 = vcmp.lt.s32.totalorder (!%p163_p2), %v863_v7, 112  ;;  %vm235_vm1 = vcmp.lt.s32.totalorder (!%p163_p2), %v863_v7, 16 }
   0xa   : > { %vm253_vm6 = vcmp.lt.s32.totalorder (!%p163_p2), %v863_v7, 1  ;;  %vm260_vm7 = vcmp.lt.s32.totalorder (!%p163_p2), %v863_v7, 127 }
   0xb   : > { %v865_v8 = vrot.slane (!%p163_p2), %v199_v6, %v202_v4  ;;  %v867_v9 = vrot.slane (!%p163_p2), %v199_v6, %v206_v5  ;;  %v878_v15 = vrot.slane (!%p163_p2), %v744_v12, %v202_v4  ;;  %v880_v16 = vrot.slane (!%p163_p2), %v744_v12, %v206_v5 }
   0xd   : > { %s1075_s16 = smov (!%p188_p3, %s735_s16), 1  ;;  %vm218_vm2 = vcmp.eq.s32.totalorder %v865_v8, 0  ;;  %vm219_vm3 = vcmp.eq.s32.totalorder %v867_v9, 0  ;;  %vm220_vm4 = vcmp.eq.s32.totalorder %v865_v8, 15  ;;  %vm221_vm5 = vcmp.eq.s32.totalorder %v867_v9, 15 }
   0xe   : > { %s753_s17 = sshll.u32 %s1075_s16, 3  ;;  %vm222_vm8 = vcmp.eq.s32.totalorder %v878_v15, 0  ;;  %vm224_vm9 = vcmp.eq.s32.totalorder %v878_v15, 15  ;;  %vm223_vm10 = vcmp.eq.s32.totalorder %v880_v16, 0  ;;  %vm225_vm11 = vcmp.eq.s32.totalorder %v880_v16, 15 }
   0xf   : > { %s192_s20 = scalar_lea.vmem %s1069_s0, %s753_s17  ;;  %s197_s9 = scalar_lea.vmem %s1073_s4, %s753_s17 }
  0x10   : > { %v843_v0 = vld [vmem:[%s192_s20] sm:$0xff] }
  0x11   : > { %238 = vrot.lane.b32.xlu1 %v843_v0, %s797_s21  ;;  %303 = vst [vmem:[#allocation2 + $0x20] sm:$0xf] %v843_v0  ;;  %229 = vrot.lane.b32.xlu0 %v843_v0, %s798_s22  ;;  %v227_v1 = vcombine.high %v843_v0, %v843_v0 }
  0x13   : > { %304 = vst [vmem:[#allocation2 + $0x28] sm:$0xf] %v227_v1 }
  0x15   : > { %240 = vrot.lane.b32.xlu1 %v227_v1, %s797_s21  ;;  %231 = vrot.lane.b32.xlu0 %v227_v1, %s798_s22 }
  0x19   : > { %281 = vrot.lane.b32.xlu1 %v227_v1, %s799_s23  ;;  %279 = vrot.lane.b32.xlu0 %v843_v0, %s799_s23 }
  0x1d   : > { %287 = vrot.lane.b32.xlu1 %v227_v1, %s800_s24  ;;  %285 = vrot.lane.b32.xlu0 %v843_v0, %s800_s24 }
  0x83   : > { %v239_v10 = vpop.permute.xlu1 %238  ;;  %v230_v11 = vpop.permute.xlu0 %229 }
  0x87   : > { %v241_v13 = vpop.permute.xlu1 %240  ;;  %v232_v14 = vpop.permute.xlu0 %231 }
  0x88   : > { %v243_v17 = vsel %vm242_vm0, %v239_v10, %v241_v13  ;;  %v244_v18 = vsel %vm242_vm0, %v241_v13, %v239_v10  ;;  %v236_v19 = vsel %vm235_vm1, %v230_v11, %v232_v14  ;;  %v237_v20 = vsel %vm235_vm1, %v232_v14, %v230_v11 }
  0x89   : > { %v245_v21 = vsel %vm218_vm2, %v243_v17, %v237_v20  ;;  %v246_v22 = vsel %vm219_vm3, %v244_v18, %v236_v19  ;;  %v247_v23 = vsel %vm220_vm4, %v237_v20, %v243_v17  ;;  %v248_v24 = vsel %vm221_vm5, %v236_v19, %v244_v18 }
  0x8a   : > { %249 = vrot.lane.b32.xlu0 %v245_v21, %s799_s23  ;;  %v271_v25 = vrot.slane %v245_v21, 4  ;;  %251 = vrot.lane.b32.xlu1 %v246_v22, %s799_s23  ;;  %v272_v26 = vrot.slane %v246_v22, 4  ;;  %v333_v27 = vrot.slane %v247_v23, 4  ;;  %v334_v28 = vrot.slane %v248_v24, 4 }
  0x8b   : > { %v282_v29 = vpop.permute.xlu1 %281  ;;  %v280_v30 = vpop.permute.xlu0 %279 }
  0x8c   : > { %275 = vst [vmem:[#allocation2] sm:$0xf0] %v271_v25  ;;  %276 = vst [vmem:[#allocation2 + $0x8] sm:$0xf0] %v272_v26  ;;  %v283_v31 = vsel %vm253_vm6, %v280_v30, %v282_v29  ;;  %v284_v32 = vsel %vm253_vm6, %v282_v29, %v280_v30  ;;  %v341_v25 = vld [vmem:[%s1070_s1] sm:$0xf] }
  0x8d   : > { %337 = vst [vmem:[#allocation2 + $0x30] sm:$0xf0] %v333_v27  ;;  %338 = vst [vmem:[#allocation2 + $0x38] sm:$0xf0] %v334_v28 }
  0x8e   : > { %256 = vrot.lane.b32.xlu0 %v245_v21, %s800_s24  ;;  %258 = vrot.lane.b32.xlu1 %v246_v22, %s800_s24 }
  0x8f   : > { %v288_v33 = vpop.permute.xlu1 %287  ;;  %v286_v34 = vpop.permute.xlu0 %285 }
  0x90   : > { %v289_v35 = vsel %vm260_vm7, %v286_v34, %v288_v33  ;;  %v290_v36 = vsel %vm260_vm7, %v288_v33, %v286_v34 }
  0x91   : > { %v291_v37 = vsel %vm222_vm8, %v289_v35, %v284_v32  ;;  %v292_v38 = vsel %vm223_vm10, %v290_v36, %v283_v31  ;;  %v293_v39 = vsel %vm224_vm9, %v284_v32, %v289_v35  ;;  %v294_v40 = vsel %vm225_vm11, %v283_v31, %v290_v36 }
  0x92   : > { %313 = vrot.lane.b32.xlu0 %v247_v23, %s799_s23  ;;  %315 = vrot.lane.b32.xlu1 %v248_v24, %s799_s23  ;;  %v297_v41 = vrot.slane %v291_v37, 4  ;;  %v298_v42 = vrot.slane %v292_v38, 4  ;;  %v307_v43 = vrot.slane %v293_v39, 4  ;;  %v308_v44 = vrot.slane %v294_v40, 4 }
  0x94   : > { %301 = vst [vmem:[#allocation2 + $0x10] sm:$0xf0] %v297_v41  ;;  %302 = vst [vmem:[#allocation2 + $0x18] sm:$0xf0] %v298_v42 }
  0x95   : > { %311 = vst [vmem:[#allocation2 + $0x20] sm:$0xf0] %v307_v43  ;;  %312 = vst [vmem:[#allocation2 + $0x28] sm:$0xf0] %v308_v44 }
  0x96   : > { %319 = vrot.lane.b32.xlu0 %v247_v23, %s800_s24  ;;  %321 = vrot.lane.b32.xlu1 %v248_v24, %s800_s24 }
  0x9c   : > { %v347_v18 = vld [vmem:[#allocation2 + $0x28] sm:$0xff]  ;;  %v346_v20 = vld [vmem:[#allocation2 + $0x20] sm:$0xff] }
  0xfc   : > { %v252_v46 = vpop.permute.xlu1 %251  ;;  %v250_v47 = vpop.permute.xlu0 %249 }
  0xfd   : > { %v254_v50 = vsel %vm253_vm6, %v250_v47, %v252_v46  ;;  %v255_v51 = vsel %vm253_vm6, %v252_v46, %v250_v47 }
 0x100   : > { %v259_v48 = vpop.permute.xlu1 %258  ;;  %v257_v49 = vpop.permute.xlu0 %256 }
 0x101   : > { %v261_v52 = vsel %vm260_vm7, %v257_v49, %v259_v48  ;;  %v262_v53 = vsel %vm260_vm7, %v259_v48, %v257_v49 }
 0x102   : > { %v263_v54 = vsel %vm222_vm8, %v261_v52, %v255_v51  ;;  %v264_v55 = vsel %vm223_vm10, %v262_v53, %v254_v50  ;;  %v265_v56 = vsel %vm224_vm9, %v255_v51, %v261_v52  ;;  %v266_v57 = vsel %vm225_vm11, %v254_v50, %v262_v53 }
 0x103   : > { %267 = vst [vmem:[#allocation2] sm:$0xf] %v263_v54  ;;  %268 = vst [vmem:[#allocation2 + $0x8] sm:$0xf] %v264_v55 }
 0x104   : > { %277 = vst [vmem:[#allocation2 + $0x10] sm:$0xf] %v265_v56  ;;  %278 = vst [vmem:[#allocation2 + $0x18] sm:$0xf] %v266_v57  ;;  %v316_v58 = vpop.permute.xlu1 %315  ;;  %v314_v59 = vpop.permute.xlu0 %313 }
 0x105   : > { %v317_v62 = vsel %vm253_vm6, %v314_v59, %v316_v58  ;;  %v318_v63 = vsel %vm253_vm6, %v316_v58, %v314_v59 }
 0x108   : > { %v322_v60 = vpop.permute.xlu1 %321  ;;  %v320_v61 = vpop.permute.xlu0 %319 }
 0x109   : > { %v323_v1 = vsel %vm260_vm7, %v320_v61, %v322_v60  ;;  %v324_v2 = vsel %vm260_vm7, %v322_v60, %v320_v61 }
 0x10a   : > { %v325_v3 = vsel %vm222_vm8, %v323_v1, %v318_v63  ;;  %v326_v4 = vsel %vm223_vm10, %v324_v2, %v317_v62  ;;  %v327_v5 = vsel %vm224_vm9, %v318_v63, %v323_v1  ;;  %v328_v6 = vsel %vm225_vm11, %v317_v62, %v324_v2  ;;  %v343_v10 = vld [vmem:[#allocation2 + $0x8] sm:$0xff]  ;;  %v342_v12 = vld [vmem:[#allocation2] sm:$0xff] }
 0x10b   : > { %v345_v11 = vld [vmem:[#allocation2 + $0x18] sm:$0xff]  ;;  %329 = vst [vmem:[#allocation2 + $0x30] sm:$0xf] %v325_v3  ;;  %330 = vst [vmem:[#allocation2 + $0x38] sm:$0xf] %v326_v4  ;;  %v344_v14 = vld [vmem:[#allocation2 + $0x10] sm:$0xff] }
 0x10c   : > { %339 = vst [vmem:[#allocation2 + $0x40] sm:$0xf] %v327_v5  ;;  %340 = vst [vmem:[#allocation2 + $0x48] sm:$0xf] %v328_v6  ;;  %v755_v13 = vpack.c.bf16 %v345_v11, %v343_v10  ;;  %v757_v17 = vpack.c.bf16 %v344_v14, %v342_v12 }
 0x10e   : > { %756 = vmatprep.subr.bf16.mxu0 %v755_v13 }
 0x10f   : > { %758 = vmatpush1.bf16.msra.mxu0 %v757_v17 }
 0x112   : > { %v349_v19 = vld [vmem:[#allocation2 + $0x38] sm:$0xff]  ;;  %v348_v21 = vld [vmem:[#allocation2 + $0x30] sm:$0xff] }
 0x113   : > { %v759_v22 = vpack.c.bf16 %v349_v19, %v347_v18  ;;  %v761_v23 = vpack.c.bf16 %v348_v21, %v346_v20  ;;  %v351_v24 = vld [vmem:[#allocation2 + $0x48] sm:$0xf]  ;;  %v350_v26 = vld [vmem:[#allocation2 + $0x40] sm:$0xf] }
 0x115   : > { %760 = vmatprep.subr.bf16.mxu0 %v759_v22 }
 0x116   : > { %762 = vmatpush1.bf16.msra.mxu0 %v761_v23 }
 0x117   : > { %745 = vmatprep.subr.msk.mxu0 %vm356_vm12, %v351_v24 }
 0x11a   : > { %746 = vmatpush1.msk.msra.mxu0 %vm356_vm12, %v350_v26 }
 0x11b   : > { %747 = vmatmul.mubr.msk.f32.vlgmr.msra.gmra.mrb[0].mxu0 %vm352_vm13, %v341_v25 }
 0x1ee   : > { %v429_v27 = vpop.f32.mrb[0].mxu0 }
 0x1ef   : > { %v434_v28 = vsel %vm356_vm12, %v429_v27, 0.0  ;;  %v431_v29 = vpop.f32.mrb[1].mxu0 }
 0x1f0   : > { %v435_v30 = vsel %vm356_vm12, %v431_v29, 0.0 }
 0x1f1   : > { %v436_v31 = vadd.f32 %v435_v30, %v434_v28 }
 0x1f3   : > { %437 = vadd.xlane.f32.xlu0 %v436_v31 }
 0x280   : > { %v438_v32 = vpop.xlane.xlu0 %437 }
 0x281   : > { %v440_v33 = vmul.f32 0.00390625, %v438_v32 }
 0x283   : > { %v441_v34 = vsub.f32 %v429_v27, %v440_v33  ;;  %v442_v35 = vsub.f32 %v431_v29, %v440_v33 }
 0x285   : > { %v443_v36 = vmul.f32 %v441_v34, %v441_v34  ;;  %v444_v37 = vmul.f32 %v442_v35, %v442_v35 }
 0x287   : > { %v445_v38 = vsel %vm356_vm12, %v443_v36, 0.0  ;;  %v446_v39 = vsel %vm356_vm12, %v444_v37, 0.0 }
 0x288   : > { %v447_v40 = vadd.f32 %v446_v39, %v445_v38 }
 0x28a   : > { %448 = vadd.xlane.f32.xlu1 %v447_v40 }
 0x317   : > { %v449_v41 = vpop.xlane.xlu1 %448 }
 0x318   : > { %v450_v42 = vmul.f32 0.00390625, %v449_v41 }
 0x31a   : > { %v451_v43 = vadd.f32 1e-05, %v450_v42 }
 0x31c   : > { %785 = vrsqrt.f32 %v451_v43 }
 0x326   : > { %v786_v44 = vpop.eup %785 }
 0x327   : > { %v454_v45 = vmul.f32 %v786_v44, %v442_v35  ;;  %v453_v46 = vmul.f32 %v786_v44, %v441_v34 }
 0x329   : > { %v456_v47 = vmax.f32 %v454_v45, 0.0  ;;  %v455_v48 = vmax.f32 %v453_v46, 0.0 }
 0x32b   : > { %459 = vrot.lane.b32.xlu1 %v456_v47, %s798_s22  ;;  %526 = vst [vmem:[#allocation2 + $0x28] sm:$0xf] %v456_v47  ;;  %457 = vrot.lane.b32.xlu0 %v455_v48, %s798_s22  ;;  %525 = vst [vmem:[#allocation2 + $0x20] sm:$0xf] %v455_v48 }
 0x32f   : > { %465 = vrot.lane.b32.xlu1 %v456_v47, %s797_s21  ;;  %463 = vrot.lane.b32.xlu0 %v455_v48, %s797_s21 }
 0x333   : > { %503 = vrot.lane.b32.xlu1 %v456_v47, %s799_s23  ;;  %501 = vrot.lane.b32.xlu0 %v455_v48, %s799_s23 }
 0x337   : > { %509 = vrot.lane.b32.xlu1 %v456_v47, %s800_s24  ;;  %507 = vrot.lane.b32.xlu0 %v455_v48, %s800_s24 }
 0x39d   : > { %v460_v49 = vpop.permute.xlu1 %459  ;;  %v458_v50 = vpop.permute.xlu0 %457 }
 0x39e   : > { %v461_v53 = vsel %vm235_vm1, %v458_v50, %v460_v49  ;;  %v462_v54 = vsel %vm235_vm1, %v460_v49, %v458_v50 }
 0x3a1   : > { %v466_v51 = vpop.permute.xlu1 %465  ;;  %v464_v52 = vpop.permute.xlu0 %463 }
 0x3a2   : > { %v467_v55 = vsel %vm242_vm0, %v464_v52, %v466_v51  ;;  %v468_v56 = vsel %vm242_vm0, %v466_v51, %v464_v52 }
 0x3a3   : > { %v470_v57 = vsel %vm219_vm3, %v468_v56, %v461_v53  ;;  %v469_v58 = vsel %vm218_vm2, %v467_v55, %v462_v54  ;;  %v472_v59 = vsel %vm221_vm5, %v461_v53, %v468_v56  ;;  %v471_v60 = vsel %vm220_vm4, %v462_v54, %v467_v55  ;;  %v563_v55 = vld [vmem:[%s1071_s2] sm:$0xf] }
 0x3a4   : > { %475 = vrot.lane.b32.xlu1 %v470_v57, %s799_s23  ;;  %v494_v61 = vrot.slane %v470_v57, 4  ;;  %473 = vrot.lane.b32.xlu0 %v469_v58, %s799_s23  ;;  %v493_v62 = vrot.slane %v469_v58, 4  ;;  %v556_v63 = vrot.slane %v472_v59, 4  ;;  %v555_v1 = vrot.slane %v471_v60, 4 }
 0x3a5   : > { %v504_v2 = vpop.permute.xlu1 %503  ;;  %v502_v3 = vpop.permute.xlu0 %501 }
 0x3a6   : > { %498 = vst [vmem:[#allocation2 + $0x8] sm:$0xf0] %v494_v61  ;;  %497 = vst [vmem:[#allocation2] sm:$0xf0] %v493_v62  ;;  %v505_v4 = vsel %vm253_vm6, %v502_v3, %v504_v2  ;;  %v506_v5 = vsel %vm253_vm6, %v504_v2, %v502_v3 }
 0x3a7   : > { %560 = vst [vmem:[#allocation2 + $0x38] sm:$0xf0] %v556_v63  ;;  %559 = vst [vmem:[#allocation2 + $0x30] sm:$0xf0] %v555_v1 }
 0x3a8   : > { %481 = vrot.lane.b32.xlu1 %v470_v57, %s800_s24  ;;  %479 = vrot.lane.b32.xlu0 %v469_v58, %s800_s24 }
 0x3a9   : > { %v510_v8 = vpop.permute.xlu1 %509  ;;  %v508_v9 = vpop.permute.xlu0 %507 }
 0x3aa   : > { %v511_v6 = vsel %vm260_vm7, %v508_v9, %v510_v8  ;;  %v512_v10 = vsel %vm260_vm7, %v510_v8, %v508_v9 }
 0x3ab   : > { %v513_v11 = vsel %vm222_vm8, %v511_v6, %v506_v5  ;;  %v514_v12 = vsel %vm223_vm10, %v512_v10, %v505_v4  ;;  %v515_v13 = vsel %vm224_vm9, %v506_v5, %v511_v6  ;;  %v516_v14 = vsel %vm225_vm11, %v505_v4, %v512_v10 }
 0x3ac   : > { %v519_v17 = vrot.slane %v513_v11, 4  ;;  %v520_v18 = vrot.slane %v514_v12, 4  ;;  %v529_v19 = vrot.slane %v515_v13, 4  ;;  %v530_v20 = vrot.slane %v516_v14, 4  ;;  %537 = vrot.lane.b32.xlu1 %v472_v59, %s799_s23  ;;  %535 = vrot.lane.b32.xlu0 %v471_v60, %s799_s23 }
 0x3ae   : > { %523 = vst [vmem:[#allocation2 + $0x10] sm:$0xf0] %v519_v17  ;;  %524 = vst [vmem:[#allocation2 + $0x18] sm:$0xf0] %v520_v18 }
 0x3af   : > { %533 = vst [vmem:[#allocation2 + $0x20] sm:$0xf0] %v529_v19  ;;  %534 = vst [vmem:[#allocation2 + $0x28] sm:$0xf0] %v530_v20 }
 0x3b0   : > { %543 = vrot.lane.b32.xlu1 %v472_v59, %s800_s24  ;;  %541 = vrot.lane.b32.xlu0 %v471_v60, %s800_s24 }
 0x3b6   : > { %v569_v50 = vld [vmem:[#allocation2 + $0x28] sm:$0xff]  ;;  %v568_v52 = vld [vmem:[#allocation2 + $0x20] sm:$0xff] }
 0x416   : > { %v476_v21 = vpop.permute.xlu1 %475  ;;  %v474_v22 = vpop.permute.xlu0 %473 }
 0x417   : > { %v477_v25 = vsel %vm253_vm6, %v474_v22, %v476_v21  ;;  %v478_v26 = vsel %vm253_vm6, %v476_v21, %v474_v22 }
 0x41a   : > { %v482_v23 = vpop.permute.xlu1 %481  ;;  %v480_v24 = vpop.permute.xlu0 %479 }
 0x41b   : > { %v483_v27 = vsel %vm260_vm7, %v480_v24, %v482_v23  ;;  %v484_v28 = vsel %vm260_vm7, %v482_v23, %v480_v24 }
 0x41c   : > { %v485_v29 = vsel %vm222_vm8, %v483_v27, %v478_v26  ;;  %v486_v30 = vsel %vm223_vm10, %v484_v28, %v477_v25  ;;  %v487_v31 = vsel %vm224_vm9, %v478_v26, %v483_v27  ;;  %v488_v32 = vsel %vm225_vm11, %v477_v25, %v484_v28 }
 0x41d   : > { %489 = vst [vmem:[#allocation2] sm:$0xf] %v485_v29  ;;  %490 = vst [vmem:[#allocation2 + $0x8] sm:$0xf] %v486_v30 }
 0x41e   : > { %499 = vst [vmem:[#allocation2 + $0x10] sm:$0xf] %v487_v31  ;;  %500 = vst [vmem:[#allocation2 + $0x18] sm:$0xf] %v488_v32  ;;  %v538_v33 = vpop.permute.xlu1 %537  ;;  %v536_v34 = vpop.permute.xlu0 %535 }
 0x41f   : > { %v539_v37 = vsel %vm253_vm6, %v536_v34, %v538_v33  ;;  %v540_v38 = vsel %vm253_vm6, %v538_v33, %v536_v34 }
 0x422   : > { %v544_v35 = vpop.permute.xlu1 %543  ;;  %v542_v36 = vpop.permute.xlu0 %541 }
 0x423   : > { %v545_v39 = vsel %vm260_vm7, %v542_v36, %v544_v35  ;;  %v546_v40 = vsel %vm260_vm7, %v544_v35, %v542_v36 }
 0x424   : > { %v547_v41 = vsel %vm222_vm8, %v545_v39, %v540_v38  ;;  %v548_v42 = vsel %vm223_vm10, %v546_v40, %v539_v37  ;;  %v549_v43 = vsel %vm224_vm9, %v540_v38, %v545_v39  ;;  %v550_v44 = vsel %vm225_vm11, %v539_v37, %v546_v40  ;;  %v565_v45 = vld [vmem:[#allocation2 + $0x8] sm:$0xff]  ;;  %v564_v47 = vld [vmem:[#allocation2] sm:$0xff] }
 0x425   : > { %v567_v46 = vld [vmem:[#allocation2 + $0x18] sm:$0xff]  ;;  %551 = vst [vmem:[#allocation2 + $0x30] sm:$0xf] %v547_v41  ;;  %552 = vst [vmem:[#allocation2 + $0x38] sm:$0xf] %v548_v42  ;;  %v566_v48 = vld [vmem:[#allocation2 + $0x10] sm:$0xff] }
 0x426   : > { %561 = vst [vmem:[#allocation2 + $0x40] sm:$0xf] %v549_v43  ;;  %562 = vst [vmem:[#allocation2 + $0x48] sm:$0xf] %v550_v44  ;;  %v763_v7 = vpack.c.bf16 %v567_v46, %v565_v45  ;;  %v765_v49 = vpack.c.bf16 %v566_v48, %v564_v47 }
 0x428   : > { %764 = vmatprep.subr.bf16.mxu1 %v763_v7 }
 0x429   : > { %766 = vmatpush1.bf16.msra.mxu1 %v765_v49 }
 0x42c   : > { %v571_v51 = vld [vmem:[#allocation2 + $0x38] sm:$0xff]  ;;  %v570_v15 = vld [vmem:[#allocation2 + $0x30] sm:$0xff] }
 0x42d   : > { %v767_v53 = vpack.c.bf16 %v571_v51, %v569_v50  ;;  %v769_v54 = vpack.c.bf16 %v570_v15, %v568_v52  ;;  %v573_v16 = vld [vmem:[#allocation2 + $0x48] sm:$0xf]  ;;  %v572_v56 = vld [vmem:[#allocation2 + $0x40] sm:$0xf] }
 0x42f   : > { %768 = vmatprep.subr.bf16.mxu1 %v767_v53 }
 0x430   : > { %770 = vmatpush1.bf16.msra.mxu1 %v769_v54 }
 0x431   : > { %748 = vmatprep.subr.msk.mxu1 %vm356_vm12, %v573_v16 }
 0x434   : > { %749 = vmatpush1.msk.msra.mxu1 %vm356_vm12, %v572_v56 }
 0x435   : > { %750 = vmatmul.mubr.msk.f32.vlgmr.msra.gmra.mrb[0].mxu1 %vm352_vm13, %v563_v55 }
 0x508   : > { %v649_v57 = vpop.f32.mrb[0].mxu1 }
 0x509   : > { %v654_v58 = vsel %vm356_vm12, %v649_v57, 0.0  ;;  %v651_v59 = vpop.f32.mrb[1].mxu1 }
 0x50a   : > { %v655_v60 = vsel %vm356_vm12, %v651_v59, 0.0 }
 0x50b   : > { %v656_v61 = vadd.f32 %v655_v60, %v654_v58 }
 0x50d   : > { %657 = vadd.xlane.f32.xlu0 %v656_v61 }
 0x59a   : > { %v658_v62 = vpop.xlane.xlu0 %657 }
 0x59b   : > { %v659_v63 = vmul.f32 0.00390625, %v658_v62 }
 0x59d   : > { %v660_v1 = vsub.f32 %v649_v57, %v659_v63  ;;  %v661_v2 = vsub.f32 %v651_v59, %v659_v63 }
 0x59f   : > { %v662_v3 = vmul.f32 %v660_v1, %v660_v1  ;;  %v663_v8 = vmul.f32 %v661_v2, %v661_v2 }
 0x5a1   : > { %v664_v9 = vsel %vm356_vm12, %v662_v3, 0.0  ;;  %v665_v4 = vsel %vm356_vm12, %v663_v8, 0.0 }
 0x5a2   : > { %v666_v5 = vadd.f32 %v665_v4, %v664_v9 }
 0x5a4   : > { %667 = vadd.xlane.f32.xlu1 %v666_v5 }
 0x631   : > { %v668_v6 = vpop.xlane.xlu1 %667 }
 0x632   : > { %v669_v10 = vmul.f32 0.00390625, %v668_v6 }
 0x634   : > { %v670_v11 = vadd.f32 1e-05, %v669_v10 }
 0x636   : > { %787 = vrsqrt.f32 %v670_v11 }
 0x640   : > { %v788_v12 = vpop.eup %787 }
 0x641   : > { %v672_v13 = vmul.f32 %v788_v12, %v660_v1  ;;  %v673_v14 = vmul.f32 %v788_v12, %v661_v2 }
 0x643   : > { %v676_v17 = vcombine.low %v672_v13, %v673_v14 }
 0x645   : > { %v678_v18 = vadd.f32 %v676_v17, %v843_v0 }
 0x647   : > { %679 = vst [vmem:[%s197_s9] sm:$0xff] %v678_v18 }
 0x648 PF: > { %s14_s15 = sadd.s32 1, %s795_s15  }
 0x649   : > { %p11_p4 = scmp.ge.s32.totalorder %s14_s15, 4  }
 0x64b   :  { %13 = sbr.rel (!%p11_p4) target bundleno = 1 (0x1), region = 67 }

</bundles_post_ra>
